<compile_context>
chip_gen: v6e
topology: v6e:2x2x1
jax: 0.10.0
libtpu: 0.0.40
codegen_flags: <defaults>
</compile_context>

<pallas_src>
import math
import functools

import jax
import jax.numpy as jnp
from jax import lax
from jax.experimental import pallas as pl
from jax.experimental.pallas import tpu as pltpu


def _cluster_loss_kernel(ci_ref, cj_ref, out_ref, *, class_num, temperature):
    K = class_num
    N = 2 * K
    inv_temp = jnp.float32(1.0 / temperature)

    ci = ci_ref[...].astype(jnp.float32)      # (B, K)
    cj = cj_ref[...].astype(jnp.float32)      # (B, K)

    # Lane-axis concat (cheap); no transposes anywhere in the kernel.
    C = jnp.concatenate([ci, cj], axis=1)     # (B, 2K)

    # ---- entropy regularizer (ne_loss): one sublane reduce, 2-D keepdims ----
    # NOTE: p * log(p) is NaN if a cluster's column sum is exactly 0 — this
    # matches the PyTorch module's behavior.
    p = jnp.sum(C, axis=0, keepdims=True)     # (1, 2K)
    p_i = p[:, :K]
    p_j = p[:, K:]
    p_i = p_i / jnp.sum(p_i)
    p_j = p_j / jnp.sum(p_j)
    log_k = jnp.float32(math.log(K))
    ne_loss = (2.0 * log_k
               + jnp.sum(p_i * jnp.log(p_i))
               + jnp.sum(p_j * jnp.log(p_j)))

    # ---- cosine similarity via column-normalized gram matrix ----
    nsq = jnp.sum(C * C, axis=0, keepdims=True)                     # (1, 2K)
    inv_n = 1.0 / jnp.maximum(jnp.sqrt(nsq), jnp.float32(1e-8))     # eps clamp (torch semantics)
    Cn = C * inv_n                                                  # (B, 2K), lane-broadcast scale

    # gram of normalized columns == full cosine-similarity matrix; single MXU pass,
    # contraction over the batch (sublane) axis, no explicit transpose.
    sim = lax.dot_general(Cn, Cn, (((0,), (0,)), ((), ())),
                          preferred_element_type=jnp.float32)       # (N, N)
    sim = sim * inv_temp

    # ---- per-row logsumexp over the N-1 off-diagonal logits (no iota masks) ----
    # sim[i, i] == 1/temperature exactly (norms never clamped for softmax inputs),
    # so subtract exp(1/T - m) from the full-row exp sum instead of a -inf mask.
    m = jnp.max(sim, axis=1, keepdims=True)                         # (N, 1)
    s = jnp.sum(jnp.exp(sim - m), axis=1, keepdims=True)            # (N, 1)
    off = s - jnp.exp(inv_temp - m)                                 # remove the diagonal term
    lse_sum = jnp.sum(m + jnp.log(off))                             # sum_i logsumexp_{j != i}

    # ---- sum of positive logits: no (N,N) gather / roll / diagonal extraction ----
    # sum_i sim[i, (i+K) mod N] = 2 * sum_{i<K} <cn_i, cn_{K+i}>
    pos_sum = 2.0 * jnp.sum(Cn[:, :K] * Cn[:, K:]) * inv_temp

    loss = (lse_sum - pos_sum) / jnp.float32(N) + ne_loss
    out_ref[0, 0] = loss


def cluster_loss(c_i, c_j, *, class_num, temperature):
    # Single invocation, no grid: at these sizes the kernel is launch-overhead
    # bound; a grid would just be a serial loop.
    # TODO(synk): if this loss is evaluated many times per step, batch multiple
    # (c_i, c_j) pairs into one pallas_call with a leading "parallel" grid axis.
    kernel = functools.partial(
        _cluster_loss_kernel, class_num=class_num, temperature=temperature
    )
    out = pl.pallas_call(
        kernel,
        out_shape=jax.ShapeDtypeStruct((1, 1), jnp.float32),
        in_specs=[
            pl.BlockSpec(memory_space=pltpu.MemorySpace.VMEM),
            pl.BlockSpec(memory_space=pltpu.MemorySpace.VMEM),
        ],
        out_specs=pl.BlockSpec(memory_space=pltpu.MemorySpace.SMEM),
    )(c_i, c_j)
    return out[0, 0]


def cluster_loss_ref(c_i, c_j, *, class_num, temperature):
    """Pure-JAX reference mirroring the PyTorch forward (for validation)."""
    K = class_num
    N = 2 * K
    p_i = jnp.sum(c_i, axis=0)
    p_i = p_i / jnp.sum(p_i)
    ne_i = math.log(K) + jnp.sum(p_i * jnp.log(p_i))
    p_j = jnp.sum(c_j, axis=0)
    p_j = p_j / jnp.sum(p_j)
    ne_j = math.log(K) + jnp.sum(p_j * jnp.log(p_j))
    ne_loss = ne_i + ne_j

    c = jnp.concatenate([c_i.T, c_j.T], axis=0)
    norm = jnp.maximum(jnp.linalg.norm(c, axis=1, keepdims=True), 1e-8)
    cn = c / norm
    sim = (cn @ cn.T) / temperature

    eye = jnp.eye(N, dtype=bool)
    sim_masked = jnp.where(eye, -jnp.inf, sim)
    lse = jax.scipy.special.logsumexp(sim_masked, axis=1)
    idx = jnp.arange(N)
    pos = sim[idx, (idx + K) % N]
    return jnp.sum(lse - pos) / N + ne_loss


if __name__ == "__main__":
    class_num = 8
    batch = 16
    temperature = 0.5

    key = jax.random.PRNGKey(0)
    k1, k2 = jax.random.split(key)
    # cluster-assignment probabilities (rows sum to 1, all positive)
    c_i = jax.nn.softmax(jax.random.normal(k1, (batch, class_num), jnp.float32), axis=1)
    c_j = jax.nn.softmax(jax.random.normal(k2, (batch, class_num), jnp.float32), axis=1)

    loss = cluster_loss(c_i, c_j, class_num=class_num, temperature=temperature)
    loss = jax.block_until_ready(loss)

    ref = cluster_loss_ref(c_i, c_j, class_num=class_num, temperature=temperature)
    assert jnp.allclose(loss, ref, rtol=1e-4, atol=1e-4), (loss, ref)

    print("KERNEL_OK")
</pallas_src>

<mosaic_0001>
module attributes {stable_mosaic.version = 11 : i64} {
  func.func @_cluster_loss_kernel(%arg0: memref<16x8xf32, #tpu.memory_space<vmem>>, %arg1: memref<16x8xf32, #tpu.memory_space<vmem>>, %arg2: memref<1x1xf32, #tpu.memory_space<smem>>) attributes {dimension_semantics = [], scalar_prefetch = 0 : i64, scratch_operands = 0 : i64, tpu.core_type = #tpu.core_type<tc>} {
    %c0 = arith.constant 0 : index
    %c0_0 = arith.constant 0 : index
    %0 = vector.load %arg0[%c0, %c0_0] : memref<16x8xf32, #tpu.memory_space<vmem>>, vector<16x8xf32>
    %c0_1 = arith.constant 0 : index
    %c0_2 = arith.constant 0 : index
    %1 = vector.load %arg1[%c0_1, %c0_2] : memref<16x8xf32, #tpu.memory_space<vmem>>, vector<16x8xf32>
    %2 = tpu.concatenate %0, %1 in 1 : vector<16x8xf32>, vector<16x8xf32> -> vector<16x16xf32>
    %cst = arith.constant dense<0.000000e+00> : vector<16xf32>
    %3 = vector.multi_reduction <add>, %2, %cst [0] : vector<16x16xf32> to vector<16xf32>
    %4 = vector.shape_cast %3 : vector<16xf32> to vector<1x16xf32>
    %5 = vector.extract_strided_slice %4 {offsets = [0, 0], sizes = [1, 8], strides = [1, 1]} : vector<1x16xf32> to vector<1x8xf32>
    %6 = vector.extract_strided_slice %4 {offsets = [0, 8], sizes = [1, 8], strides = [1, 1]} : vector<1x16xf32> to vector<1x8xf32>
    %7 = vector.shape_cast %5 : vector<1x8xf32> to vector<1x1x8xf32>
    %cst_3 = arith.constant dense<0.000000e+00> : vector<1xf32>
    %8 = vector.multi_reduction <add>, %7, %cst_3 [1, 2] : vector<1x1x8xf32> to vector<1xf32>
    %9 = vector.shape_cast %8 : vector<1xf32> to vector<1x1x1xf32>
    %10 = vector.extract %9[0, 0, 0] : f32 from vector<1x1x1xf32>
    %11 = vector.broadcast %10 : f32 to vector<1x8xf32>
    %12 = arith.divf %5, %11 : vector<1x8xf32>
    %13 = vector.shape_cast %6 : vector<1x8xf32> to vector<1x1x8xf32>
    %cst_4 = arith.constant dense<0.000000e+00> : vector<1xf32>
    %14 = vector.multi_reduction <add>, %13, %cst_4 [1, 2] : vector<1x1x8xf32> to vector<1xf32>
    %15 = vector.shape_cast %14 : vector<1xf32> to vector<1x1x1xf32>
    %16 = vector.extract %15[0, 0, 0] : f32 from vector<1x1x1xf32>
    %17 = vector.broadcast %16 : f32 to vector<1x8xf32>
    %18 = arith.divf %6, %17 : vector<1x8xf32>
    %cst_5 = arith.constant 2.000000e+00 : f32
    %cst_6 = arith.constant 2.07944155 : f32
    %19 = arith.mulf %cst_5, %cst_6 : f32
    %20 = math.log %12 : vector<1x8xf32>
    %21 = arith.mulf %12, %20 : vector<1x8xf32>
    %22 = vector.shape_cast %21 : vector<1x8xf32> to vector<1x1x8xf32>
    %cst_7 = arith.constant dense<0.000000e+00> : vector<1xf32>
    %23 = vector.multi_reduction <add>, %22, %cst_7 [1, 2] : vector<1x1x8xf32> to vector<1xf32>
    %24 = vector.shape_cast %23 : vector<1xf32> to vector<1x1x1xf32>
    %25 = vector.extract %24[0, 0, 0] : f32 from vector<1x1x1xf32>
    %26 = arith.addf %19, %25 : f32
    %27 = math.log %18 : vector<1x8xf32>
    %28 = arith.mulf %18, %27 : vector<1x8xf32>
    %29 = vector.shape_cast %28 : vector<1x8xf32> to vector<1x1x8xf32>
    %cst_8 = arith.constant dense<0.000000e+00> : vector<1xf32>
    %30 = vector.multi_reduction <add>, %29, %cst_8 [1, 2] : vector<1x1x8xf32> to vector<1xf32>
    %31 = vector.shape_cast %30 : vector<1xf32> to vector<1x1x1xf32>
    %32 = vector.extract %31[0, 0, 0] : f32 from vector<1x1x1xf32>
    %33 = arith.addf %26, %32 : f32
    %34 = arith.mulf %2, %2 : vector<16x16xf32>
    %cst_9 = arith.constant dense<0.000000e+00> : vector<16xf32>
    %35 = vector.multi_reduction <add>, %34, %cst_9 [0] : vector<16x16xf32> to vector<16xf32>
    %36 = vector.shape_cast %35 : vector<16xf32> to vector<1x16xf32>
    %37 = math.sqrt %36 : vector<1x16xf32>
    %cst_10 = arith.constant 9.99999993E-9 : f32
    %38 = vector.broadcast %cst_10 : f32 to vector<1x16xf32>
    %39 = arith.maximumf %37, %38 : vector<1x16xf32>
    %cst_11 = arith.constant 1.000000e+00 : f32
    %40 = vector.broadcast %cst_11 : f32 to vector<1x16xf32>
    %41 = arith.divf %40, %39 : vector<1x16xf32>
    %42 = vector.broadcast %41 : vector<1x16xf32> to vector<16x16xf32>
    %43 = arith.mulf %2, %42 : vector<16x16xf32>
    %cst_12 = arith.constant dense<0.000000e+00> : vector<16x16xf32>
    %44 = tpu.matmul %43, %43, %cst_12 {dimension_numbers = #tpu.dot_dimension_numbers<[0], [0], [1], [1], [0, 1, 1, 1], [], []>} : vector<16x16xf32>, vector<16x16xf32>, vector<16x16xf32> -> vector<16x16xf32>
    %cst_13 = arith.constant 2.000000e+00 : f32
    %45 = vector.broadcast %cst_13 : f32 to vector<16x16xf32>
    %46 = arith.mulf %44, %45 : vector<16x16xf32>
    %cst_14 = arith.constant dense<0xFF800000> : vector<16xf32>
    %47 = vector.multi_reduction <maximumf>, %46, %cst_14 [1] : vector<16x16xf32> to vector<16xf32>
    %48 = vector.shape_cast %47 : vector<16xf32> to vector<16x1xf32>
    %49 = vector.broadcast %48 : vector<16x1xf32> to vector<16x16xf32>
    %50 = arith.subf %46, %49 : vector<16x16xf32>
    %51 = math.exp %50 : vector<16x16xf32>
    %cst_15 = arith.constant dense<0.000000e+00> : vector<16xf32>
    %52 = vector.multi_reduction <add>, %51, %cst_15 [1] : vector<16x16xf32> to vector<16xf32>
    %53 = vector.shape_cast %52 : vector<16xf32> to vector<16x1xf32>
    %cst_16 = arith.constant 2.000000e+00 : f32
    %54 = vector.broadcast %cst_16 : f32 to vector<16x1xf32>
    %55 = arith.subf %54, %48 : vector<16x1xf32>
    %56 = math.exp %55 : vector<16x1xf32>
    %57 = arith.subf %53, %56 : vector<16x1xf32>
    %58 = math.log %57 : vector<16x1xf32>
    %59 = arith.addf %48, %58 : vector<16x1xf32>
    %60 = vector.shape_cast %59 : vector<16x1xf32> to vector<1x16x1xf32>
    %cst_17 = arith.constant dense<0.000000e+00> : vector<1xf32>
    %61 = vector.multi_reduction <add>, %60, %cst_17 [1, 2] : vector<1x16x1xf32> to vector<1xf32>
    %62 = vector.shape_cast %61 : vector<1xf32> to vector<1x1x1xf32>
    %63 = vector.extract %62[0, 0, 0] : f32 from vector<1x1x1xf32>
    %64 = vector.extract_strided_slice %43 {offsets = [0, 0], sizes = [16, 8], strides = [1, 1]} : vector<16x16xf32> to vector<16x8xf32>
    %65 = vector.extract_strided_slice %43 {offsets = [0, 8], sizes = [16, 8], strides = [1, 1]} : vector<16x16xf32> to vector<16x8xf32>
    %66 = arith.mulf %64, %65 : vector<16x8xf32>
    %67 = vector.shape_cast %66 : vector<16x8xf32> to vector<1x16x8xf32>
    %cst_18 = arith.constant dense<0.000000e+00> : vector<1xf32>
    %68 = vector.multi_reduction <add>, %67, %cst_18 [1, 2] : vector<1x16x8xf32> to vector<1xf32>
    %69 = vector.shape_cast %68 : vector<1xf32> to vector<1x1x1xf32>
    %70 = vector.extract %69[0, 0, 0] : f32 from vector<1x1x1xf32>
    %cst_19 = arith.constant 2.000000e+00 : f32
    %71 = arith.mulf %cst_19, %70 : f32
    %cst_20 = arith.constant 2.000000e+00 : f32
    %72 = arith.mulf %71, %cst_20 : f32
    %73 = arith.subf %63, %72 : f32
    %cst_21 = arith.constant 1.600000e+01 : f32
    %74 = arith.divf %73, %cst_21 : f32
    %75 = arith.addf %74, %33 : f32
    %c0_22 = arith.constant 0 : index
    %c0_23 = arith.constant 0 : index
    %76 = memref.load %arg2[%c0_22, %c0_23] : memref<1x1xf32, #tpu.memory_space<smem>>
    memref.store %75, %arg2[%c0_22, %c0_23] : memref<1x1xf32, #tpu.memory_space<smem>>
    return
  }
}

</mosaic_0001>

<bundles_post_ra>
// kernel: tpu_custom_call.1
= control target key start
LH: loop header
LB: loop body
LE: loop exit
PB: predicated region body
PF: predicated region fallthrough
CT: control target
= control target key end

     0   :  { %s390_s11 = smov 8   ;;  %s465_s0 = inlined_call_operand.vmem [shape: f32[16,8], index: 0, kind: input, shape index: {}]   ;;  %s466_s1 = inlined_call_operand.vmem [shape: f32[16,8], index: 1, kind: input, shape index: {}]   ;;  %s467_s2 = inlined_call_operand.hbm [shape: f32[1,1], index: 2, kind: output, shape index: {}]  }
   0x1   :  { %v14_v0 = vld [vmem:[%s466_s1] sm:$0xff] }
   0x2   :  { %18 = vrot.lane.b32.xlu0 %v14_v0, %s390_s11 }
   0x3   :  { %7 = vsyncpa [#allocation3], 0  ;;  %v15_v1 = vld [vmem:[%s466_s1 + $0x8] sm:$0xff]  ;;  %vm24_vm0 = vcmask 64512   ;;  %v12_v2 = vld [vmem:[%s465_s0] sm:$0xff]  ;;  %vm27_vm1 = vcmask 130048  }
   0x4   :  { %v13_v5 = vld [vmem:[%s465_s0 + $0x8] sm:$0xff]  ;;  %s391_s0 = smov 120   ;;  %vm37_vm4 = vcmask 57344   ;;  %vm270_vm5 = vcmask 7168   ;;  %s392_s30 = smov [#allocation2]  }
   0x6   :  { %20 = vrot.lane.b32.xlu0 %v15_v1, %s390_s11 }
  0x74   :  { %v19_v3 = vpop.permute.xlu0 %18 }
  0x75   :  { %v25_v4 = vsel %vm24_vm0, %v12_v2, %v19_v3 }
  0x76   :  { %v100_v6 = vmul.f32 %v25_v4, %v25_v4  ;;  %v28_v9 = vsel %vm27_vm1, %v25_v4, 0.0 }
  0x78   :  { %v21_v7 = vpop.permute.xlu0 %20  ;;  %v102_v13 = vsel %vm27_vm1, %v100_v6, 0.0 }
  0x79   :  { %v26_v8 = vsel %vm24_vm0, %v13_v5, %v21_v7 }
  0x7a   :  { %v29_v10 = vsel %vm27_vm1, %v26_v8, 0.0  ;;  %v101_v11 = vmul.f32 %v26_v8, %v26_v8 }
  0x7b   :  { %v30_v12 = vadd.f32 %v29_v10, %v28_v9 }
  0x7c   :  { %v103_v14 = vsel %vm27_vm1, %v101_v11, 0.0 }
  0x7d   :  { %v31_v15 = vrot.slane %v30_v12, 4  ;;  %v104_v16 = vadd.f32 %v103_v14, %v102_v13 }
  0x7f   :  { %v32_v17 = vadd.f32 %v31_v15, %v30_v12  ;;  %v105_v18 = vrot.slane %v104_v16, 4 }
  0x81   :  { %v33_v19 = vrot.slane %v32_v17, 2  ;;  %v106_v20 = vadd.f32 %v105_v18, %v104_v16 }
  0x83   :  { %v34_v21 = vadd.f32 %v33_v19, %v32_v17  ;;  %v107_v22 = vrot.slane %v106_v20, 2 }
  0x85   :  { %v108_v23 = vadd.f32 %v107_v22, %v106_v20  ;;  %v35_v24 = vrot.slane %v34_v21, 1 }
  0x87   :  { %v109_v25 = vrot.slane %v108_v23, 1  ;;  %v426_v26 = vadd.f32 %v35_v24, %v34_v21 }
  0x89   :  { %v110_v27 = vadd.f32 %v109_v25, %v108_v23  ;;  %52 = vrot.lane.b32.xlu0 %v426_v26, %s391_s0  ;;  %v38_v37 = vsel %vm37_vm4, %v426_v26, 0.0 }
  0x8b   :  { %356 = vrsqrt.f32 %v110_v27  ;;  %vm113_vm2 = vcmp.eq.f32.partialorder %v110_v27, inf  ;;  %v116_v30 = vand.u32 2147483648, %v110_v27  ;;  %vm115_vm3 = vcmp.eq.f32.partialorder %v110_v27, 0.0 }
  0x98   :  { %v357_v28 = vpop.eup %356 }
  0x99   :  { %v112_v29 = vmul.f32 %v357_v28, %v110_v27 }
  0x9b   :  { %v114_v31 = vsel %vm113_vm2, %v110_v27, %v112_v29 }
  0x9c   :  { %v117_v32 = vsel %vm115_vm3, %v116_v30, %v114_v31 }
  0x9d   :  { %v118_v33 = vmax.f32 %v117_v32, 1e-08 }
  0x9f   :  { %358 = vrcp.f32 %v118_v33 }
  0xac   :  { %v359_v34 = vpop.eup %358 }
  0xad   :  { %v430_v35 = vmul.f32 %v359_v34, %v26_v8  ;;  %v432_v36 = vmul.f32 %v359_v34, %v25_v4 }
  0xaf   :  { %333 = vmatprep.subr.mxu0 %v430_v35  ;;  %123 = vxpose.xlu1.b32.start [1/2] (short) (narrow) %v432_v36, 16 }
  0xb0   :  { %334 = vmatpush3.msra.mxu0 %v430_v35 }
  0xb1   :  { %335 = vmatprep.subr.mxu0 %v432_v36 }
  0xb2   :  { %336 = vmatpush3.msra.mxu0 %v432_v36 }
  0xb3   :  { %124 = vxpose.xlu1.b32.end [2/2] (short) (narrow) %v430_v35, 16 }
  0xda   :  { %39 = vadd.xlane.f32.xlu1 %v38_v37 }
  0xeb   :  { %285 = vrot.lane.b32.xlu1 %v432_v36, %s391_s0 }
  0xfb   :  { %v53_v38 = vpop.permute.xlu0 %52 }
  0xfc   :  { %v55_v39 = vsel %vm37_vm4, %v53_v38, 0.0 }
  0xfd   :  { %56 = vadd.xlane.f32.xlu0 %v55_v39 }
 0x12b   :  { %v139_v40 = vpop.trf.xlu1 }
 0x12c   :  { %337 = vmatprep.mubr.msk.f32.mxu0 %vm27_vm1, %v139_v40 }
 0x12f   :  { %v140_v41 = vpop.trf.xlu1 }
 0x130   :  { %338 = vmatmul.mubr.msk.f32.vlgmr.msra.gmra.mxu0 %vm27_vm1, %v140_v41 }
 0x163   :  { %v40_v42 = vpop.xlane.xlu1 %39 }
 0x164   :  { %v41_v43 = vrot.slane %v40_v42, 4 }
 0x166   :  { %v42_v44 = vadd.f32 %v41_v43, %v40_v42 }
 0x167   :  { %v286_v25 = vpop.permute.xlu1 %285 }
 0x168   :  { %v43_v45 = vrot.slane %v42_v44, 2  ;;  %v291_v34 = vmul.f32 %v286_v25, %v432_v36 }
 0x16a   :  { %v44_v46 = vadd.f32 %v43_v45, %v42_v44  ;;  %v293_v39 = vsel %vm24_vm0, %v291_v34, 0.0 }
 0x16c   :  { %v45_v47 = vrot.slane %v44_v46, 1 }
 0x16e   :  { %v46_v48 = vadd.f32 %v45_v47, %v44_v46 }
 0x170   :  { %340 = vpush %v46_v48 }
 0x186   :  { %v57_v49 = vpop.xlane.xlu0 %56 }
 0x187   :  { %v58_v50 = vrot.slane %v57_v49, 4 }
 0x189   :  { %v59_v51 = vadd.f32 %v58_v50, %v57_v49 }
 0x18b   :  { %v60_v52 = vrot.slane %v59_v51, 2 }
 0x18d   :  { %v61_v53 = vadd.f32 %v60_v52, %v59_v51 }
 0x18f   :  { %v62_v54 = vrot.slane %v61_v53, 1 }
 0x191   :  { %v63_v55 = vadd.f32 %v62_v54, %v61_v53 }
 0x193   :  { %342 = vpush %v63_v55 }
 0x1a1   :  { %s341_s1 = spop %340 }
 0x1a2   :  { %v48_v11 = vstv %s341_s1 }
 0x1c4   :  { %s343_s18 = spop %342 }
 0x1c5   :  { %v65_v62 = vstv %s343_s18 }
 0x1c6   :  { %360 = vrcp.f32 %v65_v62 }
 0x1d3   :  { %v361_v5 = vpop.eup %360 }
 0x1d4   :  { %v67_v6 = vmul.f32 %v361_v5, %v426_v26 }
 0x1f0   :  { %v339_v56 = vpop.f32.mrf.mxu0 }
 0x1f1   :  { %v237_v59 = vmul.f32 2.0, %v339_v56 }
 0x1f2   :  { %v227_v57 = vpop.f32.mrf.mxu0 }
 0x1f3   :  { %v236_v58 = vmul.f32 2.0, %v227_v57  ;;  %v241_v61 = vsel %vm27_vm1, %v237_v59, -inf }
 0x1f5   :  { %v238_v60 = vsel %vm27_vm1, %v236_v58, -inf }
 0x1f6   :  { %239 = vmax.xlane.f32.xlu0 %v238_v60 }
 0x1fa   :  { %242 = vmax.xlane.f32.xlu0 %v241_v61 }
 0x27f   :  { %v240_v63 = vpop.xlane.xlu0 %239 }
 0x280   :  { %v244_v0 = vsub.f32 %v236_v58, %v240_v63  ;;  %v256_v21 = vsub.f32 2.0, %v240_v63 }
 0x282   :  { %v246_v1 = vmul.f32 1.442695, %v244_v0  ;;  %v258_v22 = vmul.f32 1.442695, %v256_v21 }
 0x283   :  { %v243_v2 = vpop.xlane.xlu0 %242 }
 0x284   :  { %362 = vpow2.f32 %v246_v1  ;;  %v245_v3 = vsub.f32 %v237_v59, %v243_v2  ;;  %v257_v23 = vsub.f32 2.0, %v243_v2 }
 0x286   :  { %v248_v4 = vmul.f32 1.442695, %v245_v3  ;;  %v260_v24 = vmul.f32 1.442695, %v257_v23 }
 0x288   :  { %364 = vpow2.f32 %v248_v4 }
 0x289   :  { %366 = vlog2.f32 %v67_v6 }
 0x28a   :  { %368 = vrcp.f32 %v48_v11 }
 0x291   :  { %v363_v7 = vpop.eup %362 }
 0x292   :  { %v250_v8 = vsel %vm27_vm1, %v363_v7, 0.0 }
 0x293   :  { %251 = vadd.xlane.f32.xlu1 %v250_v8 }
 0x295   :  { %v365_v9 = vpop.eup %364 }
 0x296   :  { %v253_v10 = vsel %vm27_vm1, %v365_v9, 0.0  ;;  %v367_v12 = vpop.eup %366 }
 0x297   :  { %254 = vadd.xlane.f32.xlu0 %v253_v10  ;;  %v83_v13 = vmul.f32 0.6931472, %v367_v12  ;;  %v369_v15 = vpop.eup %368 }
 0x298   :  { %v50_v16 = vmul.f32 %v369_v15, %v426_v26 }
 0x299   :  { %v84_v14 = vmul.f32 %v83_v13, %v67_v6 }
 0x29a   :  { %370 = vlog2.f32 %v50_v16 }
 0x29b   :  { %372 = vpow2.f32 %v258_v22 }
 0x29c   :  { %374 = vpow2.f32 %v260_v24 }
 0x2a4   :  { %86 = vrot.lane.b32.xlu1 %v84_v14, %s391_s0 }
 0x2a7   :  { %v371_v17 = vpop.eup %370 }
 0x2a8   :  { %v69_v18 = vmul.f32 0.6931472, %v371_v17  ;;  %v373_v27 = vpop.eup %372 }
 0x2a9   :  { %v375_v29 = vpop.eup %374 }
 0x2aa   :  { %v70_v19 = vmul.f32 %v69_v18, %v50_v16 }
 0x2ac   :  { %v71_v20 = vsel %vm37_vm4, %v70_v19, 0.0 }
 0x2ad   :  { %287 = vrot.lane.b32.xlu0 %v430_v35, %s391_s0 }
 0x2c8   :  { %72 = vadd.xlane.f32.xlu1 %v71_v20 }
 0x31c   :  { %v252_v28 = vpop.xlane.xlu1 %251 }
 0x31d   :  { %v262_v26 = vsub.f32 %v252_v28, %v373_v27 }
 0x31f   :  { %376 = vlog2.f32 %v262_v26 }
 0x320   :  { %v255_v30 = vpop.xlane.xlu0 %254  ;;  %v87_v31 = vpop.permute.xlu1 %86 }
 0x321   :  { %v263_v32 = vsub.f32 %v255_v30, %v375_v29  ;;  %v89_v33 = vsel %vm37_vm4, %v87_v31, 0.0 }
 0x322   :  { %90 = vadd.xlane.f32.xlu0 %v89_v33 }
 0x323   :  { %378 = vlog2.f32 %v263_v32 }
 0x324   :  { %v288_v37 = vpop.permute.xlu0 %287 }
 0x325   :  { %v292_v38 = vmul.f32 %v288_v37, %v430_v35 }
 0x327   :  { %v294_v40 = vsel %vm24_vm0, %v292_v38, 0.0 }
 0x328   :  { %v295_v41 = vadd.f32 %v294_v40, %v293_v39 }
 0x32a   :  { %296 = vadd.xlane.f32.xlu1 %v295_v41 }
 0x32c   :  { %v377_v42 = vpop.eup %376 }
 0x32d   :  { %v265_v43 = vmul.f32 0.6931472, %v377_v42 }
 0x32f   :  { %v268_v46 = vadd.f32 %v265_v43, %v240_v63 }
 0x330   :  { %v379_v44 = vpop.eup %378 }
 0x331   :  { %v267_v45 = vmul.f32 0.6931472, %v379_v44  ;;  %v271_v48 = vsel %vm270_vm5, %v268_v46, 0.0 }
 0x333   :  { %v269_v47 = vadd.f32 %v267_v45, %v243_v2 }
 0x335   :  { %v272_v49 = vsel %vm270_vm5, %v269_v47, 0.0 }
 0x336   :  { %v273_v36 = vadd.f32 %v272_v49, %v271_v48 }
 0x338   :  { %274 = vadd.xlane.f32.xlu0 %v273_v36 }
 0x351   :  { %v73_v50 = vpop.xlane.xlu1 %72 }
 0x352   :  { %v74_v51 = vrot.slane %v73_v50, 4 }
 0x354   :  { %v75_v35 = vadd.f32 %v74_v51, %v73_v50 }
 0x356   :  { %v76_v52 = vrot.slane %v75_v35, 2 }
 0x358   :  { %v77_v53 = vadd.f32 %v76_v52, %v75_v35 }
 0x35a   :  { %v78_v54 = vrot.slane %v77_v53, 1 }
 0x35c   :  { %v79_v55 = vadd.f32 %v78_v54, %v77_v53 }
 0x35e   :  { %344 = vpush %v79_v55 }
 0x38f   :  { %s345_s19 = spop %344 }
 0x390   :  { %s81_s25 = sadd.f32 4.158883, %s345_s19 }
 0x3ab   :  { %v91_v56 = vpop.xlane.xlu0 %90 }
 0x3ac   :  { %v92_v57 = vrot.slane %v91_v56, 4 }
 0x3ae   :  { %v93_v58 = vadd.f32 %v92_v57, %v91_v56 }
 0x3b0   :  { %v94_v59 = vrot.slane %v93_v58, 2 }
 0x3b2   :  { %v95_v60 = vadd.f32 %v94_v59, %v93_v58 }
 0x3b3   :  { %v297_v62 = vpop.xlane.xlu1 %296 }
 0x3b4   :  { %v96_v61 = vrot.slane %v95_v60, 1  ;;  %v298_v0 = vrot.slane %v297_v62, 4 }
 0x3b6   :  { %v97_v63 = vadd.f32 %v96_v61, %v95_v60  ;;  %v299_v1 = vadd.f32 %v298_v0, %v297_v62 }
 0x3b8   :  { %346 = vpush %v97_v63  ;;  %v300_v2 = vrot.slane %v299_v1, 2 }
 0x3ba   :  { %v301_v6 = vadd.f32 %v300_v2, %v299_v1 }
 0x3bc   :  { %v302_v9 = vrot.slane %v301_v6, 1 }
 0x3be   :  { %v303_v12 = vadd.f32 %v302_v9, %v301_v6 }
 0x3c1   :  { %v275_v3 = vpop.xlane.xlu0 %274 }
 0x3c2   :  { %v276_v4 = vrot.slane %v275_v3, 4 }
 0x3c4   :  { %v277_v5 = vadd.f32 %v276_v4, %v275_v3 }
 0x3c6   :  { %v278_v7 = vrot.slane %v277_v5, 2 }
 0x3c8   :  { %v279_v8 = vadd.f32 %v278_v7, %v277_v5 }
 0x3ca   :  { %v280_v10 = vrot.slane %v279_v8, 1 }
 0x3cc   :  { %v281_v11 = vadd.f32 %v280_v10, %v279_v8 }
 0x3ce   :  { %348 = vpush %v281_v11 }
 0x3cf   :  { %350 = vpush %v303_v12 }
 0x3e9   :  { %s347_s20 = spop %346 }
 0x3ea   :  { %s99_s27 = sadd.f32 %s347_s20, %s81_s25 }
 0x3ff   :  { %s349_s21 = spop %348 }
 0x400   :  { %s351_s22 = spop %350 }
 0x401   :  { %s305_s23 = smul.f32 2.0, %s351_s22 }
 0x403   :  { %s306_s24 = smul.f32 2.0, %s305_s23 }
 0x405   :  { %s307_s26 = ssub.f32 %s349_s21, %s306_s24 }
 0x407   :  { %s310_s28 = smul.f32 0.0625, %s307_s26 }
 0x409   :  { %s311_s29 = sadd.f32 %s310_s28, %s99_s27 }
 0x40b   :  { %313 = sst [smem:[#allocation2]] %s311_s29 }
 0x40c   :  { %321 = dma.smem_to_hbm %s392_s30, 16, %s467_s2, [#allocation3]  }
 0x40d   :  { %388 = dma.done.wait [#allocation3], 16  }
 0x40e   :  { %389 = vsyncadd [#allocation3], 4294967280 }
 0x40f   :  { %325 = sfence }
 0x410   :  { %326 = vsyncpa [#allocation3], 1 }

</bundles_post_ra>
